<compile_context>
chip_gen: v7x
topology: tpu7x:2x2x1
jax: 0.10.0
libtpu: 0.0.40
codegen_flags: <defaults>
</compile_context>

<pallas_src>
import math
import functools

import jax
import jax.numpy as jnp
from jax.experimental import pallas as pl
from jax.experimental.pallas import tpu as pltpu


def _round_up(x, m):
    return (x + m - 1) // m * m


def _pick_tile_m(n_tokens):
    """Adaptive token tile: prefer large tiles while keeping zero-row padding
    waste below ~10%; ties broken toward the smaller tile (more grid steps ->
    both v7x TensorCores get work)."""
    if n_tokens <= 128:
        return max(8, _round_up(n_tokens, 8))
    best_tm, best_pad = None, None
    for tm in (512, 256, 128):
        n_pad = _round_up(n_tokens, tm)
        pad = n_pad - n_tokens
        if pad <= 0.10 * n_pad:
            return tm
        if best_pad is None or pad <= best_pad:
            best_tm, best_pad = tm, pad
    return best_tm


def _moe_kernel(x_ref, wf_ref, bf_ref, o_ref, *, num_experts, d_pad):
    """One token tile: fused (experts + gate) matmul, gate softmax, per-expert
    GELU fused into the weighted combine."""
    E, Dp = num_experts, d_pad
    tm = o_ref.shape[0]

    # Single lane-dense MXU matmul: (TM, D_in) @ (D_in, E*Dp + Gp).
    # Native-dtype operands; f32 accumulation via preferred_element_type.
    h_all = jnp.dot(x_ref[...], wf_ref[...], preferred_element_type=jnp.float32)
    h_all = h_all + bf_ref[...]                         # f32 fused bias, broadcast (1, F)

    # Gate softmax over a full 128-lane segment; padded lanes have bias=-1e30,
    # so exp() sends them to exactly 0 probability. Kept exact for parity with
    # torch.nn.functional.softmax (pl.reciprocal(approx=True) is the EUP-side
    # drop-in if tolerance allows).
    logits = h_all[:, E * Dp:]                          # (TM, Gp) lane-aligned slice
    logits = logits - jnp.max(logits, axis=-1, keepdims=True)
    ex = jnp.exp(logits)
    probs = ex / jnp.sum(ex, axis=-1, keepdims=True)    # (TM, Gp); only first E lanes used

    # GELU fused into the combine: never materialize the whole activated slab.
    # E is small & static and each slice is 128-lane aligned -> E broadcast-FMAs.
    inv_sqrt2 = 1.0 / math.sqrt(2.0)
    acc = jnp.zeros((tm, Dp), jnp.float32)
    for e in range(E):
        he = h_all[:, e * Dp:(e + 1) * Dp]
        ge = 0.5 * he * (1.0 + jax.lax.erf(he * inv_sqrt2))   # exact erf GELU (nn.GELU)
        acc = acc + probs[:, e:e + 1] * ge

    o_ref[...] = acc.astype(o_ref.dtype)


def pack_moe_params(W, b, Wg, bg, *, compute_dtype=None):
    """One-time weight repack (hoist out of the per-call forward path).

    W:  [E, D_in, D_out]  (nn.Linear weight transposed to x @ W layout)
    b:  [E, D_out]
    Wg: [D_in, E]
    bg: [E]

    Returns (w_fused, b_fused, dims):
      w_fused: (D_in, E*D_pad + G_pad) lane-dense fused weights (experts + gate)
      b_fused: (1, E*D_pad + G_pad) f32 fused bias (padded gate lanes = -1e30)
      dims:    (E, D_in, D_out, D_pad, G_pad)
    """
    E, D_in, D_out = W.shape
    if compute_dtype is None:
        compute_dtype = W.dtype

    # Only pad expert outputs when D_out is not already lane-aligned, so aligned
    # production shapes pay zero MXU / GELU / store amplification.
    D_pad = D_out if D_out % 128 == 0 else _round_up(D_out, 128)
    G_pad = _round_up(E, 128)                            # gate segment = full lane tile

    W_pad = jnp.pad(W, ((0, 0), (0, 0), (0, D_pad - D_out)))             # (E, D_in, Dp)
    W_flat = jnp.transpose(W_pad, (1, 0, 2)).reshape(D_in, E * D_pad)    # (D_in, E*Dp)
    Wg_pad = jnp.pad(Wg, ((0, 0), (0, G_pad - E)))                       # (D_in, Gp)
    w_fused = jnp.concatenate([W_flat, Wg_pad], axis=1).astype(compute_dtype)

    b_pad = jnp.pad(b, ((0, 0), (0, D_pad - D_out))).reshape(1, E * D_pad)
    bg_pad = jnp.pad(bg.reshape(1, E), ((0, 0), (0, G_pad - E)),
                     constant_values=-1e30)              # padded gate lanes -> prob 0
    b_fused = jnp.concatenate([b_pad, bg_pad], axis=1).astype(jnp.float32)

    dims = (E, D_in, D_out, D_pad, G_pad)
    return w_fused, b_fused, dims


def moe_forward_packed(x, w_fused, b_fused, dims, *, tile_m=None):
    """Per-call forward path: only flatten/pad x and run one pallas_call."""
    E, D_in, D_out, D_pad, G_pad = dims
    B, S, _ = x.shape
    N = B * S
    F = E * D_pad + G_pad

    tm = _pick_tile_m(N) if tile_m is None else tile_m
    N_pad = _round_up(N, tm)

    x_flat = x.reshape(N, D_in)
    if N_pad != N:
        x_flat = jnp.pad(x_flat, ((0, N_pad - N), (0, 0)))

    # Explicit VMEM budget: (possibly double-buffered) resident fused weights +
    # pipelined token/output tiles + f32 intermediates, with 2x headroom.
    itemsize = x.dtype.itemsize
    vmem_est = (2 * w_fused.size * w_fused.dtype.itemsize
                + 2 * b_fused.size * 4
                + 2 * tm * D_in * itemsize
                + 2 * tm * D_pad * itemsize
                + tm * F * 4 + tm * D_pad * 4)
    vmem_limit = int(min(max(2 * vmem_est, 16 * 1024 * 1024), 64 * 1024 * 1024))

    kernel = functools.partial(_moe_kernel, num_experts=E, d_pad=D_pad)

    out_flat = pl.pallas_call(
        kernel,
        out_shape=jax.ShapeDtypeStruct((N_pad, D_pad), x.dtype),
        grid_spec=pltpu.PrefetchScalarGridSpec(
            num_scalar_prefetch=0,
            grid=(N_pad // tm,),
            in_specs=[
                # Token tile streams through the pipeline.
                pl.BlockSpec((tm, D_in), lambda i: (i, 0)),
                # Fused weights / bias are grid-invariant (constant block index),
                # so Pallas DMAs them once and keeps them VMEM-resident.
                pl.BlockSpec((D_in, F), lambda i: (0, 0)),
                pl.BlockSpec((1, F), lambda i: (0, 0)),
            ],
            out_specs=pl.BlockSpec((tm, D_pad), lambda i: (i, 0)),
        ),
        compiler_params=pltpu.CompilerParams(
            dimension_semantics=("parallel",),
            vmem_limit_bytes=vmem_limit),
    )(x_flat, w_fused, b_fused)

    if N_pad != N or D_pad != D_out:
        out_flat = out_flat[:N, :D_out]
    return out_flat.reshape(B, S, D_out)


def moe_forward(x, W, b, Wg, bg, *, tile_m=None):
    """Convenience wrapper; production code should pack once and reuse."""
    w_fused, b_fused, dims = pack_moe_params(W, b, Wg, bg, compute_dtype=x.dtype)
    return moe_forward_packed(x, w_fused, b_fused, dims, tile_m=tile_m)


def moe_reference(x, W, b, Wg, bg):
    """Pure-JAX reference matching the PyTorch forward."""
    B, S, D_in = x.shape
    xf = x.reshape(B * S, D_in).astype(jnp.float32)
    h = jnp.einsum('nd,edo->neo', xf, W.astype(jnp.float32)) + b[None].astype(jnp.float32)
    h = 0.5 * h * (1.0 + jax.lax.erf(h / jnp.sqrt(2.0)))
    logits = xf @ Wg.astype(jnp.float32) + bg.astype(jnp.float32)
    probs = jax.nn.softmax(logits, axis=1)
    out = jnp.sum(probs[:, :, None] * h, axis=1)
    return out.reshape(B, S, -1).astype(x.dtype)


if __name__ == "__main__":
    # Small shapes consistent with the module: batch=2, seq=8, hidden=32, 4 experts.
    B, S = 2, 8
    D_in, D_out = 32, 32
    E = 4

    key = jax.random.PRNGKey(0)
    kx, kw, kb, kg, kbg = jax.random.split(key, 5)

    x = jax.random.normal(kx, (B, S, D_in), dtype=jnp.float32)
    # Deterministic parameter init (nn.Linear-like scale), stored transposed.
    W = jax.random.normal(kw, (E, D_in, D_out), dtype=jnp.float32) * (1.0 / math.sqrt(D_in))
    b = jax.random.normal(kb, (E, D_out), dtype=jnp.float32) * 0.01
    Wg = jax.random.normal(kg, (D_in, E), dtype=jnp.float32) * (1.0 / math.sqrt(D_in))
    bg = jax.random.normal(kbg, (E,), dtype=jnp.float32) * 0.01

    # Pack the weights ONCE (hoisted out of the forward path), then run forward.
    w_fused, b_fused, dims = pack_moe_params(W, b, Wg, bg, compute_dtype=x.dtype)
    jax.block_until_ready((w_fused, b_fused))

    out = moe_forward_packed(x, w_fused, b_fused, dims)
    jax.block_until_ready(out)

    ref = moe_reference(x, W, b, Wg, bg)
    assert out.shape == (B, S, D_out)
    assert jnp.allclose(out, ref, atol=1e-5, rtol=1e-5), "mismatch vs reference"

    print("KERNEL_OK")
</pallas_src>

<mosaic_0001>
module attributes {stable_mosaic.version = 11 : i64} {
  func.func @_moe_kernel(%arg0: i32, %arg1: memref<16x32xf32, #tpu.memory_space<vmem>>, %arg2: memref<32x640xf32, #tpu.memory_space<vmem>>, %arg3: memref<1x640xf32, #tpu.memory_space<vmem>>, %arg4: memref<16x128xf32, #tpu.memory_space<vmem>>) attributes {dimension_semantics = [#tpu.dimension_semantics<parallel>], iteration_bounds = array<i64: 1>, scalar_prefetch = 0 : i64, scratch_operands = 0 : i64, tpu.core_type = #tpu.core_type<tc>, window_params = [{transform_indices = @transform_0, window_bounds = array<i64: 16, 32>}, {pipeline_mode = #tpu.pipeline_mode<synchronous>, transform_indices = @transform_1, window_bounds = array<i64: 32, 640>}, {pipeline_mode = #tpu.pipeline_mode<synchronous>, transform_indices = @transform_2, window_bounds = array<i64: 1, 640>}, {transform_indices = @transform_3, window_bounds = array<i64: 16, 128>}]} {
    %c0 = arith.constant 0 : index
    %c0_0 = arith.constant 0 : index
    %0 = vector.load %arg1[%c0, %c0_0] : memref<16x32xf32, #tpu.memory_space<vmem>>, vector<16x32xf32>
    %c0_1 = arith.constant 0 : index
    %c0_2 = arith.constant 0 : index
    %1 = vector.load %arg2[%c0_1, %c0_2] : memref<32x640xf32, #tpu.memory_space<vmem>>, vector<32x640xf32>
    %cst = arith.constant dense<0.000000e+00> : vector<16x640xf32>
    %2 = tpu.matmul %0, %1, %cst {dimension_numbers = #tpu.dot_dimension_numbers<[1], [0], [0], [1], [0, 0, 1, 1], [], []>} : vector<16x32xf32>, vector<32x640xf32>, vector<16x640xf32> -> vector<16x640xf32>
    %c0_3 = arith.constant 0 : index
    %c0_4 = arith.constant 0 : index
    %3 = vector.load %arg3[%c0_3, %c0_4] : memref<1x640xf32, #tpu.memory_space<vmem>>, vector<1x640xf32>
    %4 = vector.broadcast %3 : vector<1x640xf32> to vector<16x640xf32>
    %5 = arith.addf %2, %4 : vector<16x640xf32>
    %6 = vector.extract_strided_slice %5 {offsets = [0, 512], sizes = [16, 128], strides = [1, 1]} : vector<16x640xf32> to vector<16x128xf32>
    %cst_5 = arith.constant dense<0xFF800000> : vector<16xf32>
    %7 = vector.multi_reduction <maximumf>, %6, %cst_5 [1] : vector<16x128xf32> to vector<16xf32>
    %8 = vector.shape_cast %7 : vector<16xf32> to vector<16x1xf32>
    %9 = vector.broadcast %8 : vector<16x1xf32> to vector<16x128xf32>
    %10 = arith.subf %6, %9 : vector<16x128xf32>
    %11 = math.exp %10 : vector<16x128xf32>
    %cst_6 = arith.constant dense<0.000000e+00> : vector<16xf32>
    %12 = vector.multi_reduction <add>, %11, %cst_6 [1] : vector<16x128xf32> to vector<16xf32>
    %13 = vector.shape_cast %12 : vector<16xf32> to vector<16x1xf32>
    %14 = vector.broadcast %13 : vector<16x1xf32> to vector<16x128xf32>
    %15 = arith.divf %11, %14 : vector<16x128xf32>
    %cst_7 = arith.constant 0.000000e+00 : f32
    %16 = vector.broadcast %cst_7 : f32 to vector<16x128xf32>
    %17 = vector.extract_strided_slice %5 {offsets = [0, 0], sizes = [16, 128], strides = [1, 1]} : vector<16x640xf32> to vector<16x128xf32>
    %cst_8 = arith.constant 5.000000e-01 : f32
    %18 = vector.broadcast %cst_8 : f32 to vector<16x128xf32>
    %19 = arith.mulf %18, %17 : vector<16x128xf32>
    %cst_9 = arith.constant 0.707106769 : f32
    %20 = vector.broadcast %cst_9 : f32 to vector<16x128xf32>
    %21 = arith.mulf %17, %20 : vector<16x128xf32>
    %22 = math.erf %21 : vector<16x128xf32>
    %cst_10 = arith.constant 1.000000e+00 : f32
    %23 = vector.broadcast %cst_10 : f32 to vector<16x128xf32>
    %24 = arith.addf %23, %22 : vector<16x128xf32>
    %25 = arith.mulf %19, %24 : vector<16x128xf32>
    %26 = vector.extract_strided_slice %15 {offsets = [0, 0], sizes = [16, 1], strides = [1, 1]} : vector<16x128xf32> to vector<16x1xf32>
    %27 = vector.broadcast %26 : vector<16x1xf32> to vector<16x128xf32>
    %28 = arith.mulf %27, %25 : vector<16x128xf32>
    %29 = arith.addf %16, %28 : vector<16x128xf32>
    %30 = vector.extract_strided_slice %5 {offsets = [0, 128], sizes = [16, 128], strides = [1, 1]} : vector<16x640xf32> to vector<16x128xf32>
    %cst_11 = arith.constant 5.000000e-01 : f32
    %31 = vector.broadcast %cst_11 : f32 to vector<16x128xf32>
    %32 = arith.mulf %31, %30 : vector<16x128xf32>
    %cst_12 = arith.constant 0.707106769 : f32
    %33 = vector.broadcast %cst_12 : f32 to vector<16x128xf32>
    %34 = arith.mulf %30, %33 : vector<16x128xf32>
    %35 = math.erf %34 : vector<16x128xf32>
    %cst_13 = arith.constant 1.000000e+00 : f32
    %36 = vector.broadcast %cst_13 : f32 to vector<16x128xf32>
    %37 = arith.addf %36, %35 : vector<16x128xf32>
    %38 = arith.mulf %32, %37 : vector<16x128xf32>
    %39 = vector.extract_strided_slice %15 {offsets = [0, 1], sizes = [16, 1], strides = [1, 1]} : vector<16x128xf32> to vector<16x1xf32>
    %40 = vector.broadcast %39 : vector<16x1xf32> to vector<16x128xf32>
    %41 = arith.mulf %40, %38 : vector<16x128xf32>
    %42 = arith.addf %29, %41 : vector<16x128xf32>
    %43 = vector.extract_strided_slice %5 {offsets = [0, 256], sizes = [16, 128], strides = [1, 1]} : vector<16x640xf32> to vector<16x128xf32>
    %cst_14 = arith.constant 5.000000e-01 : f32
    %44 = vector.broadcast %cst_14 : f32 to vector<16x128xf32>
    %45 = arith.mulf %44, %43 : vector<16x128xf32>
    %cst_15 = arith.constant 0.707106769 : f32
    %46 = vector.broadcast %cst_15 : f32 to vector<16x128xf32>
    %47 = arith.mulf %43, %46 : vector<16x128xf32>
    %48 = math.erf %47 : vector<16x128xf32>
    %cst_16 = arith.constant 1.000000e+00 : f32
    %49 = vector.broadcast %cst_16 : f32 to vector<16x128xf32>
    %50 = arith.addf %49, %48 : vector<16x128xf32>
    %51 = arith.mulf %45, %50 : vector<16x128xf32>
    %52 = vector.extract_strided_slice %15 {offsets = [0, 2], sizes = [16, 1], strides = [1, 1]} : vector<16x128xf32> to vector<16x1xf32>
    %53 = vector.broadcast %52 : vector<16x1xf32> to vector<16x128xf32>
    %54 = arith.mulf %53, %51 : vector<16x128xf32>
    %55 = arith.addf %42, %54 : vector<16x128xf32>
    %56 = vector.extract_strided_slice %5 {offsets = [0, 384], sizes = [16, 128], strides = [1, 1]} : vector<16x640xf32> to vector<16x128xf32>
    %cst_17 = arith.constant 5.000000e-01 : f32
    %57 = vector.broadcast %cst_17 : f32 to vector<16x128xf32>
    %58 = arith.mulf %57, %56 : vector<16x128xf32>
    %cst_18 = arith.constant 0.707106769 : f32
    %59 = vector.broadcast %cst_18 : f32 to vector<16x128xf32>
    %60 = arith.mulf %56, %59 : vector<16x128xf32>
    %61 = math.erf %60 : vector<16x128xf32>
    %cst_19 = arith.constant 1.000000e+00 : f32
    %62 = vector.broadcast %cst_19 : f32 to vector<16x128xf32>
    %63 = arith.addf %62, %61 : vector<16x128xf32>
    %64 = arith.mulf %58, %63 : vector<16x128xf32>
    %65 = vector.extract_strided_slice %15 {offsets = [0, 3], sizes = [16, 1], strides = [1, 1]} : vector<16x128xf32> to vector<16x1xf32>
    %66 = vector.broadcast %65 : vector<16x1xf32> to vector<16x128xf32>
    %67 = arith.mulf %66, %64 : vector<16x128xf32>
    %68 = arith.addf %55, %67 : vector<16x128xf32>
    %c0_20 = arith.constant 0 : index
    %c0_21 = arith.constant 0 : index
    %69 = vector.load %arg4[%c0_20, %c0_21] : memref<16x128xf32, #tpu.memory_space<vmem>>, vector<16x128xf32>
    tpu.vector_store %arg4[%c0_20, %c0_21], %68 {strides = array<i32>} : memref<16x128xf32, #tpu.memory_space<vmem>>, vector<16x128xf32>,
    return
  }
  func.func @transform_0(%arg0: i32) -> (i32, i32) {
    %c0_i32 = arith.constant 0 : i32
    %c0_i32_0 = arith.constant 0 : i32
    return %arg0, %c0_i32 : i32, i32
  }
  func.func @transform_1(%arg0: i32) -> (i32, i32) {
    %c0_i32 = arith.constant 0 : i32
    %c0_i32_0 = arith.constant 0 : i32
    %c0_i32_1 = arith.constant 0 : i32
    return %c0_i32, %c0_i32_0 : i32, i32
  }
  func.func @transform_2(%arg0: i32) -> (i32, i32) {
    %c0_i32 = arith.constant 0 : i32
    %c0_i32_0 = arith.constant 0 : i32
    %c0_i32_1 = arith.constant 0 : i32
    return %c0_i32, %c0_i32_0 : i32, i32
  }
  func.func @transform_3(%arg0: i32) -> (i32, i32) {
    %c0_i32 = arith.constant 0 : i32
    %c0_i32_0 = arith.constant 0 : i32
    return %arg0, %c0_i32 : i32, i32
  }
}

</mosaic_0001>

<bundles_post_ra>
// kernel: tpu_custom_call.1
= control target key start
LH: loop header
LB: loop body
LE: loop exit
PB: predicated region body
PF: predicated region fallthrough
CT: control target
= control target key end

     0   :  { %8 = vsyncpa [#allocation3], 0  ;;  %s735_s0 = inlined_call_operand.hbm [shape: f32[16,32], index: 0, kind: input, shape index: {}]   ;;  %s736_s1 = inlined_call_operand.hbm [shape: f32[32,640], index: 1, kind: input, shape index: {}]   ;;  %s737_s2 = inlined_call_operand.vmem [shape: f32[1,640], index: 2, kind: input, shape index: {}]   ;;  %s738_s3 = inlined_call_operand.hbm [shape: f32[16,128], index: 3, kind: output, shape index: {}]  }
   0x1   :  { %9 = vsyncpa [#allocation6], 0 }
   0x2   :  { %10 = vsyncpa [#allocation4], 0  ;;  %s619_s12 = smov [#allocation2]   ;;  %s547_s16 = scalar_lea.hbm %s735_s0, 256 }
   0x3   :  { %s16_s13 = sshll.u32 %s619_s12, 4  ;;  %p548_p0 = scmp.ne.s32.totalorder %s735_s0, %s547_s16  ;;  %s17_s13 = int_to_ptr.vmem [resolvable:$true] %s16_s13 }
   0x4   :  { %p551_p1 = scmp.lt.u32.totalorder %s547_s16, %s735_s0 }
   0x6   :  { %p553_p2 = pnand %p551_p1, %p548_p0 }
   0x8   :  { %556 = shalt.err (!%p553_p2)
}
   0x9   :  { %s557_s21 = scalar_lea.vmem %s17_s13, 256  ;;  %p562_p4 = scmp.lt.s32.totalorder %s17_s13, %s17_s13 }
   0xa   :  { %p558_p3 = scmp.ne.s32.totalorder %s17_s13, %s557_s21  ;;  %p563_p5 = scmp.lt.s32.totalorder %s557_s21, %s557_s21 }
   0xc   :  { %p564_p6 = por %p563_p5, %p562_p4 }
   0xe   :  { %p565_p7 = pnand %p564_p6, %p558_p3 }
  0x10   :  { %568 = shalt.err (!%p565_p7)
}
  0x11   :  { %s620_s22 = smov 128   ;;  %s621_s23 = smov 8  }
  0x12   :  { %22 = dma.hbm_to_vmem [thread:$0]  %s735_s0, 256, %s17_s13, [#allocation3], %s620_s22, %s620_s22, %s621_s23  }
  0x13   :  { %s622_s26 = smov [#allocation5]   ;;  %s569_s30 = scalar_lea.hbm %s736_s1, 2560 }
  0x14   :  { %s28_s27 = sshll.u32 %s622_s26, 4  ;;  %p570_p8 = scmp.ne.s32.totalorder %s736_s1, %s569_s30  ;;  %s29_s27 = int_to_ptr.vmem [resolvable:$true] %s28_s27 }
  0x15   :  { %p573_p9 = scmp.lt.u32.totalorder %s569_s30, %s736_s1 }
  0x17   :  { %p575_p10 = pnand %p573_p9, %p570_p8 }
  0x19   :  { %578 = shalt.err (!%p575_p10)
}
  0x1a   :  { %s579_s8 = scalar_lea.vmem %s29_s27, 2560  ;;  %p584_p12 = scmp.lt.s32.totalorder %s29_s27, %s29_s27 }
  0x1b   :  { %p580_p11 = scmp.ne.s32.totalorder %s29_s27, %s579_s8  ;;  %p585_p13 = scmp.lt.s32.totalorder %s579_s8, %s579_s8 }
  0x1d   :  { %p586_p0 = por %p585_p13, %p584_p12 }
  0x1f   :  { %p587_p1 = pnand %p586_p0, %p580_p11 }
  0x21   :  { %590 = shalt.err (!%p587_p1)
}
  0x22   :  { %s623_s0 = smov 640   ;;  %s624_s9 = smov 40  }
  0x23   :  { %34 = dma.hbm_to_vmem [thread:$0]  %s736_s1, 2560, %s29_s27, [#allocation6], %s623_s0, %s623_s0, %s624_s9  }
  0x24   :  { %613 = dma.done.wait [#allocation3], 256  }
  0x25   :  { %614 = vsyncadd [#allocation3], 4294967040 }
  0x26   :  { %615 = dma.done.wait [#allocation6], 2560  }
  0x27   :  { %616 = vsyncadd [#allocation6], 4294964736  ;;  %v625_v0 = vmov 0.0   ;;  %v46_v1 = vld [vmem:[#allocation5 + $0x8] sm:$0xff]  ;;  %v51_v2 = vld [vmem:[#allocation5 + $0x30] sm:$0xff]  ;;  %vm92_vm0 = vcmask 261120   ;;  %v67_v21 = vlaneseq }
  0x28   :  { %163 = vmatprep.mubr.f32.mxu0 %v625_v0  ;;  %240 = vmatprep.mubr.f32.mxu1 %v625_v0  ;;  %v45_v3 = vld [vmem:[#allocation5] sm:$0xff]  ;;  %v479_v4 = vpack.c.bf16 %v51_v2, %v46_v1  ;;  %v50_v5 = vld [vmem:[#allocation5 + $0x28] sm:$0xff]  ;;  %v56_v6 = vld [vmem:[#allocation5 + $0x58] sm:$0xff]  ;;  %v626_v54 = vmov 0   ;;  %v627_v1 = vmov 3   ;;  %v628_v2 = vmov 1  }
  0x29   :  { %v61_v7 = vld [vmem:[#allocation5 + $0x80] sm:$0xff]  ;;  %v481_v8 = vpack.c.bf16 %v50_v5, %v45_v3  ;;  %v55_v10 = vld [vmem:[#allocation5 + $0x50] sm:$0xff]  ;;  %v60_v11 = vld [vmem:[#allocation5 + $0x78] sm:$0xff]  ;;  %v685_v22 = vshrl.u32 %v67_v21, 7  ;;  %515 = vset.pattern.permute.xlu0 %v626_v54  ;;  %516 = vset.pattern.permute.xlu1 %v626_v54  ;;  %v629_v3 = vmov 2  }
  0x2a   :  { %v483_v9 = vpack.c.bf16 %v61_v7, %v56_v6  ;;  %480 = vmatprep.subr.bf16.mxu0 %v479_v4  ;;  %v49_v12 = vld [vmem:[#allocation5 + $0x20] sm:$0xff]  ;;  %v54_v13 = vld [vmem:[#allocation5 + $0x48] sm:$0xff]  ;;  %v485_v14 = vpack.c.bf16 %v60_v11, %v55_v10  ;;  %v59_v16 = vld [vmem:[#allocation5 + $0x70] sm:$0xff] }
  0x2b   :  { %482 = vmatpush1.bf16.msra.mxu0 %v481_v8  ;;  %v495_v15 = vpack.c.bf16 %v54_v13, %v49_v12  ;;  %v64_v17 = vld [vmem:[#allocation5 + $0x98] sm:$0xff]  ;;  %v43_v18 = vld [vmem:[#allocation2] sm:$0xff]  ;;  %v85_v25 = vsub.s32 4, %v685_v22  ;;  %v53_v35 = vld [vmem:[#allocation5 + $0x40] sm:$0xff]  ;;  %v69_v4 = vsub.s32 0, %v685_v22  ;;  %v73_v5 = vsub.s32 1, %v685_v22 }
  0x2c   :  { %484 = vmatprep.subr.bf16.mxu0 %v483_v9  ;;  %v499_v19 = vpack.c.bf16 %v64_v17, %v59_v16  ;;  %v44_v20 = vld [vmem:[#allocation2 + $0x8] sm:$0xff]  ;;  %v697_v27 = vld [vmem:[%s737_s2] sm:$0x1f]  ;;  %v58_v39 = vld [vmem:[#allocation5 + $0x68] sm:$0xff]  ;;  %v77_v6 = vsub.s32 2, %v685_v22  ;;  %s630_s2 = smov [#allocation7]  }
  0x2d   :  { %v86_v29 = vrot.slane %v697_v27, %v85_v25  ;;  %v48_v34 = vld [vmem:[#allocation5 + $0x18] sm:$0xff]  ;;  %v47_v36 = vld [vmem:[#allocation5 + $0x10] sm:$0xff]  ;;  %v57_v43 = vld [vmem:[#allocation5 + $0x60] sm:$0xff]  ;;  %v70_v7 = vrot.slane %v697_v27, %v69_v4  ;;  %v74_v8 = vrot.slane %v697_v27, %v73_v5  ;;  %s443_s13 = sshll.u32 %s630_s2, 4  ;;  %s444_s13 = int_to_ptr.vmem [resolvable:$true] %s443_s13 }
  0x2e   :  { %v487_v37 = vpack.c.bf16 %v53_v35, %v48_v34  ;;  %v52_v38 = vld [vmem:[#allocation5 + $0x38] sm:$0xff]  ;;  %v63_v40 = vld [vmem:[#allocation5 + $0x90] sm:$0xff]  ;;  %v62_v44 = vld [vmem:[#allocation5 + $0x88] sm:$0xff]  ;;  %v78_v10 = vrot.slane %v697_v27, %v77_v6  ;;  %s591_s14 = scalar_lea.vmem %s444_s13, 256  ;;  %p596_p3 = scmp.lt.s32.totalorder %s444_s13, %s444_s13 }
  0x2f   :  { %486 = vmatpush1.bf16.msra.mxu0 %v485_v14  ;;  %v489_v41 = vpack.c.bf16 %v52_v38, %v47_v36  ;;  %v491_v42 = vpack.c.bf16 %v63_v40, %v58_v39  ;;  %v493_v45 = vpack.c.bf16 %v62_v44, %v57_v43  ;;  %p592_p2 = scmp.ne.s32.totalorder %s444_s13, %s591_s14  ;;  %p597_p4 = scmp.lt.s32.totalorder %s591_s14, %s591_s14 }
  0x30   :  { %496 = vmatprep.subr.bf16.mxu0 %v495_v15  ;;  %488 = vmatprep.subr.bf16.mxu1 %v487_v37 }
  0x31   :  { %490 = vmatpush1.bf16.msra.mxu1 %v489_v41  ;;  %p598_p5 = por %p597_p4, %p596_p3 }
  0x32   :  { %456 = vmatmul.mubr.msk.f32.vlgmr.msra.gmra.mrb[0].mxu0 %vm92_vm0, %v43_v18  ;;  %492 = vmatprep.subr.bf16.mxu1 %v491_v42 }
  0x33   :  { %498 = vmatpush3.bf16.msra.mxu0 %v495_v15  ;;  %169 = vmatprep.mubr.f32.mxu0 %v625_v0  ;;  %p599_p6 = pnand %p598_p5, %p592_p2 }
  0x34   :  { %500 = vmatprep.subr.bf16.mxu0 %v499_v19 }
  0x35   :  { %494 = vmatpush1.bf16.msra.mxu1 %v493_v45 }
  0x36   :  { %457 = vmatmul.mubr.msk.f32.gmra.mrb[2].mxu0 %vm92_vm0, %v44_v20 }
  0x37   :  { %502 = vmatpush3.bf16.msra.mxu0 %v499_v19  ;;  %476 = vmatprep.mubr.msk.f32.mxu0 %vm92_vm0, %v43_v18 }
  0x38   :  { %458 = vmatmul.mubr.msk.f32.vlgmr.msra.gmra.mrb[0].mxu1 %vm92_vm0, %v43_v18  ;;  %v81_v18 = vsub.s32 3, %v685_v22 }
  0x39   :  { %246 = vmatprep.mubr.f32.mxu1 %v625_v0 }
  0x3a   :  { %477 = vmatmul.mubr.msk.f32.vlgmr.msra.gmra.mrb[4].mxu0 %vm92_vm0, %v44_v20  ;;  %v82_v25 = vrot.slane %v697_v27, %v81_v18 }
  0x3c   :  { %459 = vmatmul.mubr.msk.f32.gmra.mrb[2].mxu1 %vm92_vm0, %v44_v20 }
 0x105   :  { %v687_v23 = vpop.f32.mrb[0].mxu0 }
 0x106   :  { %v689_v24 = vpop.f32.mrb[1].mxu0  ;;  %v166_v16 = vadd.f32 %v687_v23, %v70_v7 }
 0x107   :  { %v168_v17 = vadd.f32 %v689_v24, %v74_v8 }
 0x108   :  { %v348_v19 = vmul.f32 0.70710677, %v166_v16 }
 0x109   :  { %v692_v26 = vpop.f32.mrb[2].mxu0  ;;  %v372_v20 = vmul.f32 0.70710677, %v168_v17 }
 0x10a   :  { %v699_v28 = vpop.f32.mrb[3].mxu0  ;;  %v172_v9 = vadd.f32 %v692_v26, %v70_v7 }
 0x10b   :  { %v242_v55 = vpop.f32.mrb[0].mxu1  ;;  %v174_v11 = vadd.f32 %v699_v28, %v74_v8 }
 0x10c   :  { %v244_v56 = vpop.f32.mrb[1].mxu1  ;;  %v349_v12 = vmul.f32 0.70710677, %v172_v9  ;;  %v243_v21 = vadd.f32 %v242_v55, %v78_v10  ;;  %v347_v34 = vmul.f32 0.5, %v172_v9 }
 0x10d   :  { %v478_v30 = vpop.f32.mrb[4].mxu0  ;;  %v373_v14 = vmul.f32 0.70710677, %v174_v11  ;;  %v371_v24 = vmul.f32 0.5, %v174_v11 }
 0x10e   :  { %v319_v31 = vpop.f32.mrb[5].mxu0  ;;  %v325_v33 = vadd.f32 %v478_v30, %v86_v29  ;;  %v245_v30 = vadd.f32 %v244_v56, %v82_v25 }
 0x10f   :  { %v320_v32 = vadd.f32 %v319_v31, %v86_v29  ;;  %v248_v57 = vpop.f32.mrb[2].mxu1  ;;  %v394_v29 = vmul.f32 0.70710677, %v243_v21 }
 0x110   :  { %v705_v58 = vpop.f32.mrb[3].mxu1  ;;  %v249_v13 = vadd.f32 %v248_v57, %v78_v10  ;;  %v416_v35 = vmul.f32 0.70710677, %v245_v30 }
 0x111   :  { %328 = vmax.xlane.f32.xlu0 %v320_v32  ;;  %v251_v36 = vadd.f32 %v705_v58, %v82_v25  ;;  %v392_v58 = vmul.f32 0.5, %v243_v21 }
 0x112   :  { %v395_v15 = vmul.f32 0.70710677, %v249_v13  ;;  %v393_v22 = vmul.f32 0.5, %v249_v13 }
 0x113   :  { %v417_v44 = vmul.f32 0.70710677, %v251_v36  ;;  %v415_v8 = vmul.f32 0.5, %v251_v36 }
 0x115   :  { %330 = vmax.xlane.f32.xlu0 %v325_v33 }
 0x19e   :  { %v329_v46 = vpop.xlane.xlu0 %328 }
 0x19f   :  { %v332_v47 = vsub.f32 %v320_v32, %v329_v46 }
 0x1a1   :  { %v334_v48 = vmul.f32 1.442695, %v332_v47 }
 0x1a2   :  { %v331_v49 = vpop.xlane.xlu0 %330 }
 0x1a3   :  { %523 = vpow2.f32 %v334_v48  ;;  %v333_v50 = vsub.f32 %v325_v33, %v331_v49 }
 0x1a5   :  { %v336_v51 = vmul.f32 1.442695, %v333_v50 }
 0x1a7   :  { %525 = vpow2.f32 %v336_v51 }
 0x1ad   :  { %v524_v52 = vpop.eup %523 }
 0x1ae   :  { %338 = vadd.xlane.f32.xlu1 %v524_v52 }
 0x1b1   :  { %v526_v53 = vpop.eup %525 }
 0x1b2   :  { %340 = vadd.xlane.f32.xlu1 %v526_v53 }
 0x23b   :  { %v339_v59 = vpop.xlane.xlu1 %338 }
 0x23c   :  { %527 = vrcp.f32 %v339_v59 }
 0x23f   :  { %v341_v60 = vpop.xlane.xlu1 %340 }
 0x240   :  { %529 = vrcp.f32 %v341_v60 }
 0x241   :  { %531 = verf.f32 %v349_v12 }
 0x242   :  { %533 = verf.f32 %v373_v14 }
 0x243   :  { %535 = verf.f32 %v395_v15 }
 0x244   :  { %537 = verf.f32 %v348_v19 }
 0x245   :  { %539 = verf.f32 %v372_v20 }
 0x246   :  { %v528_v61 = vpop.eup %527  ;;  %541 = verf.f32 %v394_v29 }
 0x247   :  { %v343_v62 = vmul.f32 %v528_v61, %v524_v52  ;;  %543 = verf.f32 %v416_v35  ;;  %v346_v52 = vmul.f32 0.5, %v166_v16 }
 0x248   :  { %545 = verf.f32 %v417_v44 }
 0x249   :  { %358 = vperm.xlu0 %515, %v343_v62  }
 0x24a   :  { %v530_v63 = vpop.eup %529 }
 0x24b   :  { %v345_v0 = vmul.f32 %v530_v63, %v526_v53  ;;  %v532_v26 = vpop.eup %531  ;;  %v370_v53 = vmul.f32 0.5, %v168_v17 }
 0x24c   :  { %v534_v28 = vpop.eup %533  ;;  %v353_v33 = vadd.f32 1.0, %v532_v26 }
 0x24d   :  { %363 = vperm.xlu1 %516, %v345_v0   ;;  %522 = vset.pattern.permute.xlu0 %v627_v1  ;;  %v536_v31 = vpop.eup %535  ;;  %v377_v23 = vadd.f32 1.0, %v534_v28 }
 0x24e   :  { %v399_v37 = vadd.f32 1.0, %v536_v31  ;;  %v355_v38 = vmul.f32 %v353_v33, %v347_v34  ;;  %v538_v40 = vpop.eup %537 }
 0x24f   :  { %v379_v27 = vmul.f32 %v377_v23, %v371_v24  ;;  %v540_v43 = vpop.eup %539  ;;  %v352_v47 = vadd.f32 1.0, %v538_v40 }
 0x250   :  { %v401_v45 = vmul.f32 %v399_v37, %v393_v22  ;;  %v376_v49 = vadd.f32 1.0, %v540_v43  ;;  %v542_v51 = vpop.eup %541 }
 0x251   :  { %517 = vset.pattern.permute.xlu1 %v628_v2  ;;  %v354_v56 = vmul.f32 %v352_v47, %v346_v52  ;;  %v398_v60 = vadd.f32 1.0, %v542_v51  ;;  %v544_v63 = vpop.eup %543 }
 0x252   :  { %385 = vperm.xlu1 %517, %v345_v0   ;;  %v378_v57 = vmul.f32 %v376_v49, %v370_v53  ;;  %v420_v4 = vadd.f32 1.0, %v544_v63  ;;  %v546_v5 = vpop.eup %545 }
 0x253   :  { %v421_v10 = vadd.f32 1.0, %v546_v5 }
 0x255   :  { %v423_v14 = vmul.f32 %v421_v10, %v415_v8 }
 0x256   :  { %518 = vset.pattern.permute.xlu1 %v629_v3 }
 0x257   :  { %407 = vperm.xlu1 %518, %v345_v0  }
 0x25b   :  { %519 = vset.pattern.permute.xlu1 %v628_v2  ;;  %v414_v2 = vmul.f32 0.5, %v245_v30 }
 0x25c   :  { %381 = vperm.xlu1 %519, %v343_v62  }
 0x25d   :  { %v422_v9 = vmul.f32 %v420_v4, %v414_v2 }
 0x260   :  { %520 = vset.pattern.permute.xlu1 %v629_v3 }
 0x261   :  { %403 = vperm.xlu1 %520, %v343_v62  }
 0x265   :  { %521 = vset.pattern.permute.xlu1 %v627_v1  ;;  %v400_v1 = vmul.f32 %v398_v60, %v392_v58 }
 0x266   :  { %425 = vperm.xlu1 %521, %v343_v62  }
 0x26a   :  { %429 = vperm.xlu1 %521, %v345_v0  }
 0x2c8   :  { %v359_v54 = vpop.permute.xlu0 %358 }
 0x2c9   :  { %v366_v61 = vmul.f32 %v359_v54, %v354_v56 }
 0x2cc   :  { %v364_v32 = vpop.permute.xlu1 %363 }
 0x2cd   :  { %v367_v41 = vmul.f32 %v364_v32, %v355_v38 }
 0x2d1   :  { %v386_v39 = vpop.permute.xlu1 %385 }
 0x2d2   :  { %v389_v42 = vmul.f32 %v386_v39, %v379_v27 }
 0x2d4   :  { %v391_v46 = vadd.f32 %v389_v42, %v367_v41 }
 0x2d6   :  { %v408_v48 = vpop.permute.xlu1 %407 }
 0x2d7   :  { %v411_v50 = vmul.f32 %v408_v48, %v401_v45 }
 0x2d9   :  { %v413_v55 = vadd.f32 %v411_v50, %v391_v46 }
 0x2db   :  { %v382_v59 = vpop.permute.xlu1 %381 }
 0x2dc   :  { %v388_v62 = vmul.f32 %v382_v59, %v378_v57 }
 0x2de   :  { %v390_v0 = vadd.f32 %v388_v62, %v366_v61 }
 0x2e0   :  { %v404_v3 = vpop.permute.xlu1 %403 }
 0x2e1   :  { %v410_v6 = vmul.f32 %v404_v3, %v400_v1 }
 0x2e3   :  { %v412_v7 = vadd.f32 %v410_v6, %v390_v0 }
 0x2e5   :  { %v426_v11 = vpop.permute.xlu1 %425 }
 0x2e6   :  { %v432_v12 = vmul.f32 %v426_v11, %v422_v9 }
 0x2e8   :  { %v434_v13 = vadd.f32 %v432_v12, %v412_v7 }
 0x2e9   :  { %v430_v15 = vpop.permute.xlu1 %429 }
 0x2ea   :  { %436 = vst [vmem:[#allocation7] sm:$0xff] %v434_v13  ;;  %v433_v16 = vmul.f32 %v430_v15, %v423_v14 }
 0x2ec   :  { %v435_v17 = vadd.f32 %v433_v16, %v413_v55 }
 0x2ee   :  { %437 = vst [vmem:[#allocation7 + $0x8] sm:$0xff] %v435_v17 }
 0x2ef   :  { %602 = shalt.err (!%p599_p6)
}
 0x2f0   :  { %s603_s17 = scalar_lea.hbm %s738_s3, 256 }
 0x2f1   :  { %p604_p7 = scmp.ne.s32.totalorder %s738_s3, %s603_s17  ;;  %p607_p8 = scmp.lt.u32.totalorder %s603_s17, %s738_s3 }
 0x2f3   :  { %p609_p9 = pnand %p607_p8, %p604_p7 }
 0x2f5   :  { %612 = shalt.err (!%p609_p9)
}
 0x2f6   :  { %449 = dma.vmem_to_hbm [thread:$0]  %s444_s13, 256, %s738_s3, [#allocation4], %s620_s22, %s620_s22, %s621_s23  }
 0x2f7   :  { %617 = dma.done.wait [#allocation4], 256  }
 0x2f8   :  { %618 = vsyncadd [#allocation4], 4294967040 }
 0x2f9   :  { %453 = vsyncpa [#allocation3], 1 }
 0x2fa   :  { %454 = vsyncpa [#allocation6], 1 }
 0x2fb   :  { %455 = vsyncpa [#allocation4], 1 }

</bundles_post_ra>
